<compile_context>
chip_gen: v6e
topology: v6e:2x2x1
jax: 0.10.0
libtpu: 0.0.40
codegen_flags: <defaults>
</compile_context>

<pallas_src>
import math

import jax
import jax.numpy as jnp
from jax.experimental import pallas as pl
from jax.experimental.pallas import tpu as pltpu

MIN_VALUE = -9.18180582429698e+37   # torch.clamp_min bound
MAX_VALUE = 9.152457547119235e+37   # torch.clamp_max bound

_LANES = 128
_SUBLANES = 8
_MIN_TILE = _SUBLANES * _LANES      # 1024 rows = one dense (8,128) f32 vreg
_TILE_ROWS_CAP = 16 * 1024          # per-tile row cap (~0.9 MiB VMEM dbl-buffered)
_FAST_PATH_ROWS = 64 * 1024         # below this, plain XLA is faster end-to-end
_MAX_TILES_HINT = 8                 # aim for >= 8 tiles (pipelining / v7x megacore)


def _round_up(x, m):
    return (x + m - 1) // m * m


def _cdiv(a, b):
    return (a + b - 1) // b


def _linear_clamp_kernel(w_ref, b_ref, x_ref, o_ref):
    """w_ref: SMEM (K, N); b_ref: SMEM (N,);
    x_ref: VMEM (K, S, 128); o_ref: VMEM (N, S, 128), S % 8 == 0."""
    k_dim = x_ref.shape[0]
    n_dim = o_ref.shape[0]
    # Hoist the K per-feature slabs once; each is a dense (S, 128) array.
    xs = [x_ref[k] for k in range(k_dim)]
    for n in range(n_dim):                       # static unroll, N = 4
        y = xs[0] * w_ref[0, n] + b_ref[n]
        for k in range(1, k_dim):
            y = y + xs[k] * w_ref[k, n]
        y = jnp.maximum(y, MIN_VALUE)            # torch.clamp_min
        y = jnp.minimum(y, MAX_VALUE)            # torch.clamp_max
        o_ref[n] = y.astype(o_ref.dtype)


def linear_clamp(x, weight, bias, *, tile_rows=_TILE_ROWS_CAP,
                 min_pallas_rows=_FAST_PATH_ROWS):
    """clamp(x @ weight.T + bias, MIN_VALUE, MAX_VALUE).

    `weight` uses torch.nn.Linear layout (out_features, in_features);
    `x` has the feature dim (= in_features) last.
    """
    *lead, K = x.shape
    N, K_w = weight.shape
    if K_w != K:
        raise ValueError(f"weight expects in_features={K_w}, x has {K}")
    M = math.prod(lead) if lead else 1

    w_kn = weight.T.astype(x.dtype)              # (K, N), tiny
    b = bias.astype(x.dtype)

    if M < min_pallas_rows:
        # Fast path: small problems are dominated by pallas_call overhead and
        # the wrapper layout passes; XLA's fused elementwise path wins here.
        y = jnp.clip(x.reshape(M, K) @ w_kn + b, MIN_VALUE, MAX_VALUE)
        return y.reshape(*lead, N)

    # Feature-major: (M, K) -> (K, M) so M sits on the lane axis.
    # TODO(synk): this transpose (and the matching output transpose) is one
    # extra HBM pass each; removing them needs the producer/consumer of this
    # op to agree on a channel-major layout at graph level.
    x2 = x.reshape(M, K).T

    m_pad = _round_up(max(M, _MIN_TILE), _MIN_TILE)      # pad to 1024 only
    if m_pad != M:
        x2 = jnp.pad(x2, ((0, 0), (0, m_pad - M)))

    # Tile choice: <= tile_rows, a multiple of 1024, and enough tiles that
    # double-buffering overlaps DMA with compute and v7x shards tiles across
    # both TensorCores. The ragged last tile (if any) is masked by Pallas.
    tile_rows = max(_MIN_TILE, _round_up(tile_rows, _MIN_TILE))
    n_tiles = max(_cdiv(m_pad, tile_rows),
                  min(_MAX_TILES_HINT, m_pad // _MIN_TILE))
    tm = _round_up(_cdiv(m_pad, n_tiles), _MIN_TILE)

    s_total = m_pad // _LANES            # sublane-axis extent of the 3-D view
    s_blk = tm // _LANES                 # multiple of 8 -> dense (8,128) tiles
    grid = (_cdiv(s_total, s_blk),)

    x3 = x2.reshape(K, s_total, _LANES)  # free, row-major-preserving reshape

    itemsize = jnp.dtype(x.dtype).itemsize
    cost = pl.CostEstimate(
        flops=2 * M * K * N + 2 * M * N,
        transcendentals=0,
        bytes_accessed=(M * (K + N) + K * N + N) * itemsize,
    )

    out = pl.pallas_call(
        _linear_clamp_kernel,
        out_shape=jax.ShapeDtypeStruct((N, s_total, _LANES), x.dtype),
        grid=grid,
        in_specs=[
            pl.BlockSpec(memory_space=pltpu.MemorySpace.SMEM),      # w (K, N)
            pl.BlockSpec(memory_space=pltpu.MemorySpace.SMEM),      # b (N,)
            pl.BlockSpec((K, s_blk, _LANES), lambda i: (0, i, 0)),  # x slabs
        ],
        out_specs=pl.BlockSpec((N, s_blk, _LANES), lambda i: (0, i, 0)),
        compiler_params=pltpu.CompilerParams(
            dimension_semantics=("parallel",),
        ),
        cost_estimate=cost,
    )(w_kn, b, x3)

    out = out.reshape(N, m_pad)[:, :M].T        # back to (M, N)
    return out.reshape(*lead, N)


if __name__ == "__main__":
    key = jax.random.PRNGKey(0)
    k_x, k_w, k_b, k_x2 = jax.random.split(key, 4)

    in_features, out_features = 3, 4
    bound = 1.0 / math.sqrt(in_features)
    # torch.nn.Linear layout: weight (out_features, in_features), bias (out,).
    weight = jax.random.uniform(k_w, (out_features, in_features),
                                minval=-bound, maxval=bound, dtype=jnp.float32)
    bias = jax.random.uniform(k_b, (out_features,),
                              minval=-bound, maxval=bound, dtype=jnp.float32)

    def ref_fn(x):
        return jnp.clip(jnp.einsum("...k,nk->...n", x, weight) + bias,
                        MIN_VALUE, MAX_VALUE)

    # Small input with the feature dim (=3) last, as nn.Linear requires.
    x_small = jax.random.normal(k_x, (2, 16, 16, 3), dtype=jnp.float32)
    out_small = jax.block_until_ready(
        linear_clamp(x_small, weight, bias, min_pallas_rows=0))  # force Pallas
    assert out_small.shape == (2, 16, 16, 4)
    assert jnp.allclose(out_small, ref_fn(x_small), atol=1e-5, rtol=1e-5)

    # Row count not a multiple of the tile: exercises the masked ragged tail.
    x_ragged = jax.random.normal(k_x2, (9179, 3), dtype=jnp.float32)
    out_ragged = jax.block_until_ready(
        linear_clamp(x_ragged, weight, bias, tile_rows=2048, min_pallas_rows=0))
    assert jnp.allclose(out_ragged, ref_fn(x_ragged), atol=1e-5, rtol=1e-5)

    # Fast path (pure XLA) also matches the reference.
    out_fast = jax.block_until_ready(linear_clamp(x_small, weight, bias))
    assert jnp.allclose(out_fast, ref_fn(x_small), atol=1e-5, rtol=1e-5)

    print("KERNEL_OK")
</pallas_src>

<mosaic_0001>
module attributes {stable_mosaic.version = 11 : i64} {
  func.func @_linear_clamp_kernel(%arg0: i32, %arg1: memref<3x4xf32, #tpu.memory_space<smem>>, %arg2: memref<4xf32, #tpu.memory_space<smem>>, %arg3: memref<3x8x128xf32, #tpu.memory_space<vmem>>, %arg4: memref<4x8x128xf32, #tpu.memory_space<vmem>>) attributes {dimension_semantics = [#tpu.dimension_semantics<parallel>], iteration_bounds = array<i64: 1>, scalar_prefetch = 0 : i64, scratch_operands = 0 : i64, tpu.core_type = #tpu.core_type<tc>, window_params = [{transform_indices = @transform_0, window_bounds = array<i64: 3, 4>}, {transform_indices = @transform_1, window_bounds = array<i64: 4>}, {transform_indices = @transform_2, window_bounds = array<i64: 3, 8, 128>}, {transform_indices = @transform_3, window_bounds = array<i64: 4, 8, 128>}]} {
    %c0 = arith.constant 0 : index
    %c0_0 = arith.constant 0 : index
    %c0_1 = arith.constant 0 : index
    %0 = vector.load %arg3[%c0, %c0_0, %c0_1] : memref<3x8x128xf32, #tpu.memory_space<vmem>>, vector<1x8x128xf32>
    %1 = vector.shape_cast %0 : vector<1x8x128xf32> to vector<8x128xf32>
    %c1 = arith.constant 1 : index
    %c0_2 = arith.constant 0 : index
    %c0_3 = arith.constant 0 : index
    %2 = vector.load %arg3[%c1, %c0_2, %c0_3] : memref<3x8x128xf32, #tpu.memory_space<vmem>>, vector<1x8x128xf32>
    %3 = vector.shape_cast %2 : vector<1x8x128xf32> to vector<8x128xf32>
    %c2 = arith.constant 2 : index
    %c0_4 = arith.constant 0 : index
    %c0_5 = arith.constant 0 : index
    %4 = vector.load %arg3[%c2, %c0_4, %c0_5] : memref<3x8x128xf32, #tpu.memory_space<vmem>>, vector<1x8x128xf32>
    %5 = vector.shape_cast %4 : vector<1x8x128xf32> to vector<8x128xf32>
    %c0_6 = arith.constant 0 : index
    %c0_7 = arith.constant 0 : index
    %6 = memref.load %arg1[%c0_6, %c0_7] : memref<3x4xf32, #tpu.memory_space<smem>>
    %7 = vector.broadcast %6 : f32 to vector<8x128xf32>
    %8 = arith.mulf %1, %7 : vector<8x128xf32>
    %c0_8 = arith.constant 0 : index
    %9 = memref.load %arg2[%c0_8] : memref<4xf32, #tpu.memory_space<smem>>
    %10 = vector.broadcast %9 : f32 to vector<8x128xf32>
    %11 = arith.addf %8, %10 : vector<8x128xf32>
    %c1_9 = arith.constant 1 : index
    %c0_10 = arith.constant 0 : index
    %12 = memref.load %arg1[%c1_9, %c0_10] : memref<3x4xf32, #tpu.memory_space<smem>>
    %13 = vector.broadcast %12 : f32 to vector<8x128xf32>
    %14 = arith.mulf %3, %13 : vector<8x128xf32>
    %15 = arith.addf %11, %14 : vector<8x128xf32>
    %c2_11 = arith.constant 2 : index
    %c0_12 = arith.constant 0 : index
    %16 = memref.load %arg1[%c2_11, %c0_12] : memref<3x4xf32, #tpu.memory_space<smem>>
    %17 = vector.broadcast %16 : f32 to vector<8x128xf32>
    %18 = arith.mulf %5, %17 : vector<8x128xf32>
    %19 = arith.addf %15, %18 : vector<8x128xf32>
    %cst = arith.constant -9.18180626E+37 : f32
    %20 = vector.broadcast %cst : f32 to vector<8x128xf32>
    %21 = arith.maximumf %19, %20 : vector<8x128xf32>
    %cst_13 = arith.constant 9.15245761E+37 : f32
    %22 = vector.broadcast %cst_13 : f32 to vector<8x128xf32>
    %23 = arith.minimumf %21, %22 : vector<8x128xf32>
    %c0_14 = arith.constant 0 : index
    %c0_15 = arith.constant 0 : index
    %c0_16 = arith.constant 0 : index
    %24 = vector.load %arg4[%c0_14, %c0_15, %c0_16] : memref<4x8x128xf32, #tpu.memory_space<vmem>>, vector<1x8x128xf32>
    %25 = vector.shape_cast %24 : vector<1x8x128xf32> to vector<8x128xf32>
    %26 = vector.shape_cast %23 : vector<8x128xf32> to vector<1x8x128xf32>
    tpu.vector_store %arg4[%c0_14, %c0_15, %c0_16], %26 {strides = array<i32>} : memref<4x8x128xf32, #tpu.memory_space<vmem>>, vector<1x8x128xf32>,
    %c0_17 = arith.constant 0 : index
    %c1_18 = arith.constant 1 : index
    %27 = memref.load %arg1[%c0_17, %c1_18] : memref<3x4xf32, #tpu.memory_space<smem>>
    %28 = vector.broadcast %27 : f32 to vector<8x128xf32>
    %29 = arith.mulf %1, %28 : vector<8x128xf32>
    %c1_19 = arith.constant 1 : index
    %30 = memref.load %arg2[%c1_19] : memref<4xf32, #tpu.memory_space<smem>>
    %31 = vector.broadcast %30 : f32 to vector<8x128xf32>
    %32 = arith.addf %29, %31 : vector<8x128xf32>
    %c1_20 = arith.constant 1 : index
    %c1_21 = arith.constant 1 : index
    %33 = memref.load %arg1[%c1_20, %c1_21] : memref<3x4xf32, #tpu.memory_space<smem>>
    %34 = vector.broadcast %33 : f32 to vector<8x128xf32>
    %35 = arith.mulf %3, %34 : vector<8x128xf32>
    %36 = arith.addf %32, %35 : vector<8x128xf32>
    %c2_22 = arith.constant 2 : index
    %c1_23 = arith.constant 1 : index
    %37 = memref.load %arg1[%c2_22, %c1_23] : memref<3x4xf32, #tpu.memory_space<smem>>
    %38 = vector.broadcast %37 : f32 to vector<8x128xf32>
    %39 = arith.mulf %5, %38 : vector<8x128xf32>
    %40 = arith.addf %36, %39 : vector<8x128xf32>
    %cst_24 = arith.constant -9.18180626E+37 : f32
    %41 = vector.broadcast %cst_24 : f32 to vector<8x128xf32>
    %42 = arith.maximumf %40, %41 : vector<8x128xf32>
    %cst_25 = arith.constant 9.15245761E+37 : f32
    %43 = vector.broadcast %cst_25 : f32 to vector<8x128xf32>
    %44 = arith.minimumf %42, %43 : vector<8x128xf32>
    %c1_26 = arith.constant 1 : index
    %c0_27 = arith.constant 0 : index
    %c0_28 = arith.constant 0 : index
    %45 = vector.load %arg4[%c1_26, %c0_27, %c0_28] : memref<4x8x128xf32, #tpu.memory_space<vmem>>, vector<1x8x128xf32>
    %46 = vector.shape_cast %45 : vector<1x8x128xf32> to vector<8x128xf32>
    %47 = vector.shape_cast %44 : vector<8x128xf32> to vector<1x8x128xf32>
    tpu.vector_store %arg4[%c1_26, %c0_27, %c0_28], %47 {strides = array<i32>} : memref<4x8x128xf32, #tpu.memory_space<vmem>>, vector<1x8x128xf32>,
    %c0_29 = arith.constant 0 : index
    %c2_30 = arith.constant 2 : index
    %48 = memref.load %arg1[%c0_29, %c2_30] : memref<3x4xf32, #tpu.memory_space<smem>>
    %49 = vector.broadcast %48 : f32 to vector<8x128xf32>
    %50 = arith.mulf %1, %49 : vector<8x128xf32>
    %c2_31 = arith.constant 2 : index
    %51 = memref.load %arg2[%c2_31] : memref<4xf32, #tpu.memory_space<smem>>
    %52 = vector.broadcast %51 : f32 to vector<8x128xf32>
    %53 = arith.addf %50, %52 : vector<8x128xf32>
    %c1_32 = arith.constant 1 : index
    %c2_33 = arith.constant 2 : index
    %54 = memref.load %arg1[%c1_32, %c2_33] : memref<3x4xf32, #tpu.memory_space<smem>>
    %55 = vector.broadcast %54 : f32 to vector<8x128xf32>
    %56 = arith.mulf %3, %55 : vector<8x128xf32>
    %57 = arith.addf %53, %56 : vector<8x128xf32>
    %c2_34 = arith.constant 2 : index
    %c2_35 = arith.constant 2 : index
    %58 = memref.load %arg1[%c2_34, %c2_35] : memref<3x4xf32, #tpu.memory_space<smem>>
    %59 = vector.broadcast %58 : f32 to vector<8x128xf32>
    %60 = arith.mulf %5, %59 : vector<8x128xf32>
    %61 = arith.addf %57, %60 : vector<8x128xf32>
    %cst_36 = arith.constant -9.18180626E+37 : f32
    %62 = vector.broadcast %cst_36 : f32 to vector<8x128xf32>
    %63 = arith.maximumf %61, %62 : vector<8x128xf32>
    %cst_37 = arith.constant 9.15245761E+37 : f32
    %64 = vector.broadcast %cst_37 : f32 to vector<8x128xf32>
    %65 = arith.minimumf %63, %64 : vector<8x128xf32>
    %c2_38 = arith.constant 2 : index
    %c0_39 = arith.constant 0 : index
    %c0_40 = arith.constant 0 : index
    %66 = vector.load %arg4[%c2_38, %c0_39, %c0_40] : memref<4x8x128xf32, #tpu.memory_space<vmem>>, vector<1x8x128xf32>
    %67 = vector.shape_cast %66 : vector<1x8x128xf32> to vector<8x128xf32>
    %68 = vector.shape_cast %65 : vector<8x128xf32> to vector<1x8x128xf32>
    tpu.vector_store %arg4[%c2_38, %c0_39, %c0_40], %68 {strides = array<i32>} : memref<4x8x128xf32, #tpu.memory_space<vmem>>, vector<1x8x128xf32>,
    %c0_41 = arith.constant 0 : index
    %c3 = arith.constant 3 : index
    %69 = memref.load %arg1[%c0_41, %c3] : memref<3x4xf32, #tpu.memory_space<smem>>
    %70 = vector.broadcast %69 : f32 to vector<8x128xf32>
    %71 = arith.mulf %1, %70 : vector<8x128xf32>
    %c3_42 = arith.constant 3 : index
    %72 = memref.load %arg2[%c3_42] : memref<4xf32, #tpu.memory_space<smem>>
    %73 = vector.broadcast %72 : f32 to vector<8x128xf32>
    %74 = arith.addf %71, %73 : vector<8x128xf32>
    %c1_43 = arith.constant 1 : index
    %c3_44 = arith.constant 3 : index
    %75 = memref.load %arg1[%c1_43, %c3_44] : memref<3x4xf32, #tpu.memory_space<smem>>
    %76 = vector.broadcast %75 : f32 to vector<8x128xf32>
    %77 = arith.mulf %3, %76 : vector<8x128xf32>
    %78 = arith.addf %74, %77 : vector<8x128xf32>
    %c2_45 = arith.constant 2 : index
    %c3_46 = arith.constant 3 : index
    %79 = memref.load %arg1[%c2_45, %c3_46] : memref<3x4xf32, #tpu.memory_space<smem>>
    %80 = vector.broadcast %79 : f32 to vector<8x128xf32>
    %81 = arith.mulf %5, %80 : vector<8x128xf32>
    %82 = arith.addf %78, %81 : vector<8x128xf32>
    %cst_47 = arith.constant -9.18180626E+37 : f32
    %83 = vector.broadcast %cst_47 : f32 to vector<8x128xf32>
    %84 = arith.maximumf %82, %83 : vector<8x128xf32>
    %cst_48 = arith.constant 9.15245761E+37 : f32
    %85 = vector.broadcast %cst_48 : f32 to vector<8x128xf32>
    %86 = arith.minimumf %84, %85 : vector<8x128xf32>
    %c3_49 = arith.constant 3 : index
    %c0_50 = arith.constant 0 : index
    %c0_51 = arith.constant 0 : index
    %87 = vector.load %arg4[%c3_49, %c0_50, %c0_51] : memref<4x8x128xf32, #tpu.memory_space<vmem>>, vector<1x8x128xf32>
    %88 = vector.shape_cast %87 : vector<1x8x128xf32> to vector<8x128xf32>
    %89 = vector.shape_cast %86 : vector<8x128xf32> to vector<1x8x128xf32>
    tpu.vector_store %arg4[%c3_49, %c0_50, %c0_51], %89 {strides = array<i32>} : memref<4x8x128xf32, #tpu.memory_space<vmem>>, vector<1x8x128xf32>,
    return
  }
  func.func @transform_0(%arg0: i32) -> (i32, i32) {
    %c0_i32 = arith.constant 0 : i32
    %c0_i32_0 = arith.constant 0 : i32
    %c0_i32_1 = arith.constant 0 : i32
    return %c0_i32, %c0_i32_0 : i32, i32
  }
  func.func @transform_1(%arg0: i32) -> i32 {
    %c0_i32 = arith.constant 0 : i32
    %c0_i32_0 = arith.constant 0 : i32
    return %c0_i32 : i32
  }
  func.func @transform_2(%arg0: i32) -> (i32, i32, i32) {
    %c0_i32 = arith.constant 0 : i32
    %c0_i32_0 = arith.constant 0 : i32
    %c0_i32_1 = arith.constant 0 : i32
    return %c0_i32, %arg0, %c0_i32_0 : i32, i32, i32
  }
  func.func @transform_3(%arg0: i32) -> (i32, i32, i32) {
    %c0_i32 = arith.constant 0 : i32
    %c0_i32_0 = arith.constant 0 : i32
    %c0_i32_1 = arith.constant 0 : i32
    return %c0_i32, %arg0, %c0_i32_0 : i32, i32, i32
  }
}

</mosaic_0001>

<bundles_post_ra>
// kernel: tpu_custom_call.1
= control target key start
LH: loop header
LB: loop body
LE: loop exit
PB: predicated region body
PF: predicated region fallthrough
CT: control target
= control target key end

     0   :  { %8 = vsyncpa [#allocation5], 0  ;;  %s279_s0 = inlined_call_operand.hbm [shape: f32[3,4], index: 0, kind: input, shape index: {}]   ;;  %s280_s1 = inlined_call_operand.vmem [shape: f32[4], index: 1, kind: input, shape index: {}]   ;;  %s281_s2 = inlined_call_operand.hbm [shape: f32[3,8,128], index: 2, kind: input, shape index: {}]   ;;  %s282_s3 = inlined_call_operand.hbm [shape: f32[4,8,128], index: 3, kind: output, shape index: {}]  }
   0x1   :  { %9 = vsyncpa [#allocation6], 0 }
   0x2   :  { %10 = vsyncpa [#allocation3], 0 }
   0x3   :  { %11 = vsyncpa [#allocation4], 0  ;;  %s26_s14 = sshll.u32 %s280_s1, 4  ;;  %s235_s15 = smov [#allocation2]   ;;  %s27_s14 = int_to_ptr.vmem [resolvable:$true] %s26_s14 }
   0x4   :  { %19 = dma.hbm_to_smem %s279_s0, 64, %s235_s15, [#allocation5]  }
   0x5   :  { %s175_s18 = scalar_lea.vmem %s27_s14, 16  ;;  %p180_p1 = scmp.lt.s32.totalorder %s27_s14, %s27_s14 }
   0x6   :  { %p176_p0 = scmp.ne.s32.totalorder %s27_s14, %s175_s18  ;;  %p181_p2 = scmp.lt.s32.totalorder %s175_s18, %s175_s18 }
   0x8   :  { %p182_p3 = por %p181_p2, %p180_p1 }
   0xa   :  { %p183_p4 = pnand %p182_p3, %p176_p0 }
   0xc   :  { %186 = shalt.err (!%p183_p4)
}
   0xd   :  { %s236_s19 = smov [#allocation7]   ;;  %s237_s20 = smov [#allocation8]  }
   0xe   :  { %29 = dma.vmem_to_smem %s27_s14, 16, %s236_s19, [#allocation6]  }
   0xf   :  { %s35_s21 = sshll.u32 %s237_s20, 4  ;;  %s36_s21 = int_to_ptr.vmem [resolvable:$true] %s35_s21 }
  0x10   :  { %s195_s22 = scalar_lea.vmem %s36_s21, 384  ;;  %p200_p6 = scmp.lt.s32.totalorder %s36_s21, %s36_s21 }
  0x11   :  { %p196_p5 = scmp.ne.s32.totalorder %s36_s21, %s195_s22  ;;  %p201_p7 = scmp.lt.s32.totalorder %s195_s22, %s195_s22 }
  0x13   :  { %p202_p8 = por %p201_p7, %p200_p6 }
  0x15   :  { %p203_p9 = pnand %p202_p8, %p196_p5 }
  0x17   :  { %206 = shalt.err (!%p203_p9)
}
  0x18   :  { %s238_s0 = smov 128   ;;  %s239_s1 = smov 8  }
  0x19   :  { %41 = dma.hbm_to_vmem [thread:$0]  %s281_s2, 384, %s36_s21, [#allocation3], %s238_s0, %s238_s0, %s239_s1  }
  0x1a   :  { %227 = dma.done.wait [#allocation5], 64  }
  0x1b   :  { %228 = vsyncadd [#allocation5], 4294967232 }
  0x1c   :  { %229 = dma.done.wait [#allocation6], 16  }
  0x1d   :  { %230 = vsyncadd [#allocation6], 4294967280 }
  0x1e   :  { %231 = dma.done.wait [#allocation3], 384  }
  0x1f   :  { %232 = vsyncadd [#allocation3], 4294966912 }
  0x20   :  { %51 = sfence }
  0x21   :  { %s57_s25 = sld [smem:[#allocation2]]  ;;  %v52_v0 = vld [vmem:[#allocation8] sm:$0xff]  ;;  %v54_v1 = vld [vmem:[#allocation8 + $0x8] sm:$0xff]  ;;  %v56_v3 = vld [vmem:[#allocation8 + $0x10] sm:$0xff]  ;;  %s240_s13 = smov [#allocation9]  }
  0x22   :  { %s60_s26 = sld [smem:[#allocation7]]  ;;  %s133_s14 = sshll.u32 %s240_s13, 4  ;;  %s134_s14 = int_to_ptr.vmem [resolvable:$true] %s133_s14 }
  0x23   :  { %s147_s27 = sld [smem:[#allocation2 + $0x80]]  ;;  %s207_s15 = scalar_lea.vmem %s134_s14, 512 }
  0x24   :  { %s148_s28 = sld [smem:[#allocation2 + $0x100]]  ;;  %p208_p10 = scmp.ne.s32.totalorder %s134_s14, %s207_s15 }
  0x25   :  { %s149_s29 = sld [smem:[#allocation2 + $0x1]]  ;;  %p212_p11 = scmp.lt.s32.totalorder %s134_s14, %s134_s14 }
  0x26   :  { %s150_s30 = sld [smem:[#allocation7 + $0x1]]  ;;  %p213_p12 = scmp.lt.s32.totalorder %s207_s15, %s207_s15 }
  0x27   :  { %v58_v2 = vstv %s57_s25  ;;  %s151_s4 = sld [smem:[#allocation2 + $0x81]] }
  0x28   :  { %v59_v4 = vmul.f32 %v58_v2, %v52_v0  ;;  %v61_v5 = vstv %s60_s26  ;;  %s152_s2 = sld [smem:[#allocation2 + $0x101]]  ;;  %p214_p13 = por %p213_p12, %p212_p11 }
  0x29   :  { %v64_v6 = vstv %s147_s27  ;;  %s153_s5 = sld [smem:[#allocation2 + $0x2]] }
  0x2a   :  { %v62_v7 = vadd.f32 %v61_v5, %v59_v4  ;;  %v65_v8 = vmul.f32 %v64_v6, %v54_v1  ;;  %v68_v9 = vstv %s148_s28  ;;  %s154_s6 = sld [smem:[#allocation7 + $0x2]]  ;;  %p215_p0 = pnand %p214_p13, %p208_p10 }
  0x2b   :  { %v69_v10 = vmul.f32 %v68_v9, %v56_v3  ;;  %v75_v11 = vstv %s149_s29  ;;  %s155_s7 = sld [smem:[#allocation2 + $0x82]] }
  0x2c   :  { %v66_v12 = vadd.f32 %v65_v8, %v62_v7  ;;  %v76_v13 = vmul.f32 %v75_v11, %v52_v0  ;;  %v78_v14 = vstv %s150_s30  ;;  %s156_s8 = sld [smem:[#allocation2 + $0x102]] }
  0x2d   :  { %v81_v15 = vstv %s151_s4  ;;  %s157_s9 = sld [smem:[#allocation2 + $0x3]] }
  0x2e   :  { %v70_v16 = vadd.f32 %v69_v10, %v66_v12  ;;  %v79_v17 = vadd.f32 %v78_v14, %v76_v13  ;;  %v82_v18 = vmul.f32 %v81_v15, %v54_v1  ;;  %v85_v19 = vstv %s152_s2  ;;  %s158_s10 = sld [smem:[#allocation7 + $0x3]] }
  0x2f   :  { %v86_v20 = vmul.f32 %v85_v19, %v56_v3  ;;  %v93_v21 = vstv %s153_s5  ;;  %s159_s11 = sld [smem:[#allocation2 + $0x83]] }
  0x30   :  { %v71_v22 = vmax.f32 %v70_v16, -9.181806e+37  ;;  %v83_v23 = vadd.f32 %v82_v18, %v79_v17  ;;  %v94_v24 = vmul.f32 %v93_v21, %v52_v0  ;;  %v96_v25 = vstv %s154_s6  ;;  %s160_s12 = sld [smem:[#allocation2 + $0x103]] }
  0x31   :  { %v99_v26 = vstv %s155_s7 }
  0x32   :  { %v72_v27 = vmin.f32 %v71_v22, 9.152458e+37  ;;  %v87_v28 = vadd.f32 %v86_v20, %v83_v23  ;;  %v97_v29 = vadd.f32 %v96_v25, %v94_v24  ;;  %v100_v30 = vmul.f32 %v99_v26, %v54_v1 }
  0x33   :  { %v103_v31 = vstv %s156_s8  ;;  %v111_v32 = vstv %s157_s9 }
  0x34   :  { %73 = vst [vmem:[#allocation9] sm:$0xff] %v72_v27  ;;  %v88_v33 = vmax.f32 %v87_v28, -9.181806e+37  ;;  %v101_v34 = vadd.f32 %v100_v30, %v97_v29  ;;  %v104_v35 = vmul.f32 %v103_v31, %v56_v3  ;;  %v112_v36 = vmul.f32 %v111_v32, %v52_v0 }
  0x35   :  { %v114_v37 = vstv %s158_s10  ;;  %v117_v38 = vstv %s159_s11 }
  0x36   :  { %v89_v39 = vmin.f32 %v88_v33, 9.152458e+37  ;;  %v105_v40 = vadd.f32 %v104_v35, %v101_v34  ;;  %v115_v41 = vadd.f32 %v114_v37, %v112_v36  ;;  %v118_v42 = vmul.f32 %v117_v38, %v54_v1 }
  0x37   :  { %v121_v43 = vstv %s160_s12 }
  0x38   :  { %91 = vst [vmem:[#allocation9 + $0x8] sm:$0xff] %v89_v39  ;;  %v106_v44 = vmax.f32 %v105_v40, -9.181806e+37  ;;  %v119_v45 = vadd.f32 %v118_v42, %v115_v41  ;;  %v122_v46 = vmul.f32 %v121_v43, %v56_v3 }
  0x3a   :  { %v107_v47 = vmin.f32 %v106_v44, 9.152458e+37  ;;  %v123_v48 = vadd.f32 %v122_v46, %v119_v45 }
  0x3c   :  { %109 = vst [vmem:[#allocation9 + $0x10] sm:$0xff] %v107_v47  ;;  %v124_v49 = vmax.f32 %v123_v48, -9.181806e+37 }
  0x3e   :  { %v125_v50 = vmin.f32 %v124_v49, 9.152458e+37 }
  0x40   :  { %127 = vst [vmem:[#allocation9 + $0x18] sm:$0xff] %v125_v50 }
  0x41   :  { %218 = shalt.err (!%p215_p0)
}
  0x42   :  { %139 = dma.vmem_to_hbm [thread:$0]  %s134_s14, 512, %s282_s3, [#allocation4], %s238_s0, %s238_s0, %s239_s1  }
  0x43   :  { %233 = dma.done.wait [#allocation4], 512  }
  0x44   :  { %234 = vsyncadd [#allocation4], 4294966784 }
  0x45   :  { %143 = vsyncpa [#allocation3], 1 }
  0x46   :  { %144 = vsyncpa [#allocation4], 1 }
  0x47   :  { %145 = vsyncpa [#allocation5], 1 }
  0x48   :  { %146 = vsyncpa [#allocation6], 1 }

</bundles_post_ra>
